<compile_context>
chip_gen: v7x
topology: tpu7x:2x2x1
jax: 0.10.0
libtpu: 0.0.40
codegen_flags: <defaults>
</compile_context>

<pallas_src>
import functools

import jax
import jax.numpy as jnp
from jax import lax
from jax.experimental import pallas as pl
from jax.experimental.pallas import tpu as pltpu


def _round_up(x: int, m: int) -> int:
    return ((x + m - 1) // m) * m


# --------------------------- Pass 1: aggregation ---------------------------
def gine_aggregate_kernel(xg_ref, ea_ref, src_ref, dst_ref, agg_ref):
    """agg[n, :] += sum_e 1[dst_e == n] * ReLU(x[src_e] + edge_attr_e)."""
    k = pl.program_id(0)                    # edge-tile index (reduction axis)
    te = ea_ref.shape[0]
    n_pad = xg_ref.shape[0]

    @pl.when(k == 0)
    def _init():
        agg_ref[...] = jnp.zeros_like(agg_ref)

    # ---- gather x[src]: one-hot [te, n_pad] (MXU-natural, no transpose) ----
    # src_ref is [te, 1] (sublane-major) so it broadcasts along lanes.
    nids_g = lax.broadcasted_iota(jnp.int32, (te, n_pad), 1)
    oh_src = (nids_g == src_ref[...]).astype(jnp.bfloat16)          # [te, n_pad]
    x_j = jnp.dot(oh_src, xg_ref[...],
                  preferred_element_type=jnp.float32)               # [te, dp_in]

    # ---- message: ReLU(x_j + edge_attr), f32 on the VPU ----
    msg = jnp.maximum(x_j + ea_ref[...].astype(jnp.float32), 0.0)   # [te, dp_in]

    # ---- scatter-add: one-hot [n_pad, te] @ msg (MXU-natural) ----
    # dst_ref is [1, te] (lane-major) so it broadcasts along sublanes.
    nids_s = lax.broadcasted_iota(jnp.int32, (n_pad, te), 0)
    oh_dst = (nids_s == dst_ref[...]).astype(jnp.bfloat16)          # [n_pad, te]
    agg_ref[...] += jnp.dot(oh_dst, msg.astype(jnp.bfloat16),
                            preferred_element_type=jnp.float32)     # [n_pad, dp_in]


# ---------------------- Pass 2: combine + gin_nn MLP ----------------------
def gine_mlp_kernel(x_ref, agg_ref, w1_ref, b1_ref, w2_ref, b2_ref, out_ref):
    # GINEConv default eps = 0  ->  (1 + eps) * x == x
    h = x_ref[...] + agg_ref[...]                                   # [tn, dp_in] f32
    h1 = jnp.maximum(
        jnp.dot(h.astype(jnp.bfloat16), w1_ref[...],
                preferred_element_type=jnp.float32) + b1_ref[...],
        0.0)
    out = jnp.dot(h1.astype(jnp.bfloat16), w2_ref[...],
                  preferred_element_type=jnp.float32) + b2_ref[...]
    out_ref[...] = out.astype(out_ref.dtype)


@functools.partial(jax.jit, static_argnames=("tile_n", "tile_e"))
def gine_conv_forward(x, edge_index, edge_attr, w1, b1, w2, b2,
                      *, tile_n=256, tile_e=256):
    """Pad/layout glue in plain JAX + two tiled Pallas kernel calls."""
    N, d_in = x.shape
    E = edge_attr.shape[0]
    d_out = w2.shape[1]

    dp_in = _round_up(d_in, 128)
    dp_out = _round_up(d_out, 128)

    # Clamp tile sizes so small graphs collapse to a single grid step.
    tile_e_eff = min(tile_e, _round_up(max(E, 1), 128))
    e_pad = _round_up(max(E, 1), tile_e_eff)
    tile_n_eff = min(tile_n, _round_up(max(N, 1), 8))
    n_pad = _round_up(max(N, 1), tile_n_eff)

    # Zero-padded node / edge features (padding contributes exact zeros).
    xp = jnp.zeros((n_pad, dp_in), jnp.float32).at[:N, :d_in].set(
        x.astype(jnp.float32))
    xg_bf = xp.astype(jnp.bfloat16)          # bf16 gather table (cast once)
    eap = jnp.zeros((e_pad, dp_in), jnp.bfloat16).at[:E, :d_in].set(
        edge_attr.astype(jnp.bfloat16))      # streamed in bf16

    # Padded edges use an out-of-range sentinel (= n_pad) -> all-zero one-hot
    # rows/cols, so they contribute nothing.
    src = jnp.full((e_pad, 1), n_pad, jnp.int32).at[:E, 0].set(
        edge_index[0].astype(jnp.int32))     # sublane-major for the gather
    dst = jnp.full((1, e_pad), n_pad, jnp.int32).at[0, :E].set(
        edge_index[1].astype(jnp.int32))     # lane-major for the scatter

    # Zero-padded gin_nn parameters (weights bf16 for MXU, biases f32).
    w1_bf = jnp.zeros((dp_in, dp_out), jnp.bfloat16).at[:d_in, :d_out].set(
        w1.astype(jnp.bfloat16))
    w2_bf = jnp.zeros((dp_out, dp_out), jnp.bfloat16).at[:d_out, :d_out].set(
        w2.astype(jnp.bfloat16))
    b1p = jnp.zeros((1, dp_out), jnp.float32).at[0, :d_out].set(
        b1.astype(jnp.float32))
    b2p = jnp.zeros((1, dp_out), jnp.float32).at[0, :d_out].set(
        b2.astype(jnp.float32))

    # ---- Pass 1: edge-tiled aggregation into a full-resident accumulator ----
    agg = pl.pallas_call(
        gine_aggregate_kernel,
        out_shape=jax.ShapeDtypeStruct((n_pad, dp_in), jnp.float32),
        grid_spec=pltpu.PrefetchScalarGridSpec(
            num_scalar_prefetch=0,
            grid=(e_pad // tile_e_eff,),
            in_specs=[
                # bf16 node table: resident (constant index map, DMA'd once)
                pl.BlockSpec((n_pad, dp_in), lambda k: (0, 0)),
                # edge attributes (bf16): streamed along the edge axis
                pl.BlockSpec((tile_e_eff, dp_in), lambda k: (k, 0)),
                # src indices: sublane-major [te, 1]
                pl.BlockSpec((tile_e_eff, 1), lambda k: (k, 0)),
                # dst indices: lane-major [1, te]
                pl.BlockSpec((1, tile_e_eff), lambda k: (0, k)),
            ],
            # Constant output index map => resident accumulator across the
            # reduction axis, written back to HBM once.
            out_specs=pl.BlockSpec((n_pad, dp_in), lambda k: (0, 0)),
        ),
        compiler_params=pltpu.CompilerParams(
            dimension_semantics=("arbitrary",),
            vmem_limit_bytes=32 * 1024 * 1024,
        ),
    )(xg_bf, eap, src, dst)

    # ---- Pass 2: node-tiled combine + MLP (parallel, megacore-shardable) ----
    out_p = pl.pallas_call(
        gine_mlp_kernel,
        out_shape=jax.ShapeDtypeStruct((n_pad, dp_out), jnp.float32),
        grid_spec=pltpu.PrefetchScalarGridSpec(
            num_scalar_prefetch=0,
            grid=(n_pad // tile_n_eff,),
            in_specs=[
                pl.BlockSpec((tile_n_eff, dp_in), lambda i: (i, 0)),   # x
                pl.BlockSpec((tile_n_eff, dp_in), lambda i: (i, 0)),   # agg
                pl.BlockSpec((dp_in, dp_out), lambda i: (0, 0)),       # w1 (bf16)
                pl.BlockSpec((1, dp_out), lambda i: (0, 0)),           # b1
                pl.BlockSpec((dp_out, dp_out), lambda i: (0, 0)),      # w2 (bf16)
                pl.BlockSpec((1, dp_out), lambda i: (0, 0)),           # b2
            ],
            out_specs=pl.BlockSpec((tile_n_eff, dp_out), lambda i: (i, 0)),
        ),
        compiler_params=pltpu.CompilerParams(
            dimension_semantics=("parallel",),
            vmem_limit_bytes=32 * 1024 * 1024,
        ),
    )(xp, agg, w1_bf, b1p, w2_bf, b2p)

    return out_p[:N, :d_out]


def reference_gine(x, edge_index, edge_attr, w1, b1, w2, b2):
    """Pure-JAX (f32) reference for sanity checking."""
    src, dst = edge_index[0], edge_index[1]
    msg = jax.nn.relu(x[src] + edge_attr)
    agg = jnp.zeros_like(x).at[dst].add(msg)
    h = x + agg
    h1 = jax.nn.relu(h @ w1 + b1)
    return h1 @ w2 + b2


if __name__ == "__main__":
    key = jax.random.PRNGKey(0)
    N, E, D_IN, D_OUT = 16, 32, 32, 64   # small synthetic graph

    k_x, k_ea, k_ei, k_w1, k_b1, k_w2, k_b2 = jax.random.split(key, 7)
    x = jax.random.normal(k_x, (N, D_IN), dtype=jnp.float32)
    edge_attr = jax.random.normal(k_ea, (E, D_IN), dtype=jnp.float32)
    edge_index = jax.random.randint(k_ei, (2, E), 0, N, dtype=jnp.int32)

    # gin_nn = Linear(D_IN, D_OUT) -> ReLU -> Linear(D_OUT, D_OUT)
    w1 = jax.random.normal(k_w1, (D_IN, D_OUT), dtype=jnp.float32) * 0.1
    b1 = jax.random.normal(k_b1, (D_OUT,), dtype=jnp.float32) * 0.1
    w2 = jax.random.normal(k_w2, (D_OUT, D_OUT), dtype=jnp.float32) * 0.1
    b2 = jax.random.normal(k_b2, (D_OUT,), dtype=jnp.float32) * 0.1

    out = gine_conv_forward(x, edge_index, edge_attr, w1, b1, w2, b2)
    out = jax.block_until_ready(out)

    ref = reference_gine(x, edge_index, edge_attr, w1, b1, w2, b2)
    # bf16 gather/scatter/MLP matmuls -> slightly looser tolerance than f32.
    assert out.shape == ref.shape, "shape mismatch vs reference"
    assert jnp.allclose(out, ref, atol=5e-2, rtol=5e-2), "mismatch vs reference"

    print("KERNEL_OK")
</pallas_src>

<mosaic_0001>
module attributes {stable_mosaic.version = 11 : i64} {
  func.func @gine_mlp_kernel(%arg0: i32, %arg1: memref<16x128xf32, #tpu.memory_space<vmem>>, %arg2: memref<16x128xf32, #tpu.memory_space<vmem>>, %arg3: memref<128x128xbf16, #tpu.memory_space<vmem>>, %arg4: memref<1x128xf32, #tpu.memory_space<vmem>>, %arg5: memref<128x128xbf16, #tpu.memory_space<vmem>>, %arg6: memref<1x128xf32, #tpu.memory_space<vmem>>, %arg7: memref<16x128xf32, #tpu.memory_space<vmem>>) attributes {dimension_semantics = [#tpu.dimension_semantics<parallel>], iteration_bounds = array<i64: 1>, scalar_prefetch = 0 : i64, scratch_operands = 0 : i64, tpu.core_type = #tpu.core_type<tc>, window_params = [{transform_indices = @transform_0, window_bounds = array<i64: 16, 128>}, {transform_indices = @transform_1, window_bounds = array<i64: 16, 128>}, {pipeline_mode = #tpu.pipeline_mode<synchronous>, transform_indices = @transform_2, window_bounds = array<i64: 128, 128>}, {pipeline_mode = #tpu.pipeline_mode<synchronous>, transform_indices = @transform_3, window_bounds = array<i64: 1, 128>}, {pipeline_mode = #tpu.pipeline_mode<synchronous>, transform_indices = @transform_4, window_bounds = array<i64: 128, 128>}, {pipeline_mode = #tpu.pipeline_mode<synchronous>, transform_indices = @transform_5, window_bounds = array<i64: 1, 128>}, {transform_indices = @transform_6, window_bounds = array<i64: 16, 128>}]} {
    %c0 = arith.constant 0 : index
    %c0_0 = arith.constant 0 : index
    %0 = vector.load %arg1[%c0, %c0_0] : memref<16x128xf32, #tpu.memory_space<vmem>>, vector<16x128xf32>
    %c0_1 = arith.constant 0 : index
    %c0_2 = arith.constant 0 : index
    %1 = vector.load %arg2[%c0_1, %c0_2] : memref<16x128xf32, #tpu.memory_space<vmem>>, vector<16x128xf32>
    %2 = arith.addf %0, %1 : vector<16x128xf32>
    %3 = arith.truncf %2 : vector<16x128xf32> to vector<16x128xbf16>
    %c0_3 = arith.constant 0 : index
    %c0_4 = arith.constant 0 : index
    %4 = vector.load %arg3[%c0_3, %c0_4] : memref<128x128xbf16, #tpu.memory_space<vmem>>, vector<128x128xbf16>
    %cst = arith.constant dense<0.000000e+00> : vector<16x128xf32>
    %5 = tpu.matmul %3, %4, %cst {dimension_numbers = #tpu.dot_dimension_numbers<[1], [0], [0], [1], [0, 0, 1, 1], [], []>} : vector<16x128xbf16>, vector<128x128xbf16>, vector<16x128xf32> -> vector<16x128xf32>
    %c0_5 = arith.constant 0 : index
    %c0_6 = arith.constant 0 : index
    %6 = vector.load %arg4[%c0_5, %c0_6] : memref<1x128xf32, #tpu.memory_space<vmem>>, vector<1x128xf32>
    %7 = vector.broadcast %6 : vector<1x128xf32> to vector<16x128xf32>
    %8 = arith.addf %5, %7 : vector<16x128xf32>
    %cst_7 = arith.constant 0.000000e+00 : f32
    %9 = vector.broadcast %cst_7 : f32 to vector<16x128xf32>
    %10 = arith.maximumf %8, %9 : vector<16x128xf32>
    %11 = arith.truncf %10 : vector<16x128xf32> to vector<16x128xbf16>
    %c0_8 = arith.constant 0 : index
    %c0_9 = arith.constant 0 : index
    %12 = vector.load %arg5[%c0_8, %c0_9] : memref<128x128xbf16, #tpu.memory_space<vmem>>, vector<128x128xbf16>
    %cst_10 = arith.constant dense<0.000000e+00> : vector<16x128xf32>
    %13 = tpu.matmul %11, %12, %cst_10 {dimension_numbers = #tpu.dot_dimension_numbers<[1], [0], [0], [1], [0, 0, 1, 1], [], []>} : vector<16x128xbf16>, vector<128x128xbf16>, vector<16x128xf32> -> vector<16x128xf32>
    %c0_11 = arith.constant 0 : index
    %c0_12 = arith.constant 0 : index
    %14 = vector.load %arg6[%c0_11, %c0_12] : memref<1x128xf32, #tpu.memory_space<vmem>>, vector<1x128xf32>
    %15 = vector.broadcast %14 : vector<1x128xf32> to vector<16x128xf32>
    %16 = arith.addf %13, %15 : vector<16x128xf32>
    %c0_13 = arith.constant 0 : index
    %c0_14 = arith.constant 0 : index
    %17 = vector.load %arg7[%c0_13, %c0_14] : memref<16x128xf32, #tpu.memory_space<vmem>>, vector<16x128xf32>
    tpu.vector_store %arg7[%c0_13, %c0_14], %16 {strides = array<i32>} : memref<16x128xf32, #tpu.memory_space<vmem>>, vector<16x128xf32>,
    return
  }
  func.func @transform_0(%arg0: i32) -> (i32, i32) {
    %c0_i32 = arith.constant 0 : i32
    %c0_i32_0 = arith.constant 0 : i32
    return %arg0, %c0_i32 : i32, i32
  }
  func.func @transform_1(%arg0: i32) -> (i32, i32) {
    %c0_i32 = arith.constant 0 : i32
    %c0_i32_0 = arith.constant 0 : i32
    return %arg0, %c0_i32 : i32, i32
  }
  func.func @transform_2(%arg0: i32) -> (i32, i32) {
    %c0_i32 = arith.constant 0 : i32
    %c0_i32_0 = arith.constant 0 : i32
    %c0_i32_1 = arith.constant 0 : i32
    return %c0_i32, %c0_i32_0 : i32, i32
  }
  func.func @transform_3(%arg0: i32) -> (i32, i32) {
    %c0_i32 = arith.constant 0 : i32
    %c0_i32_0 = arith.constant 0 : i32
    %c0_i32_1 = arith.constant 0 : i32
    return %c0_i32, %c0_i32_0 : i32, i32
  }
  func.func @transform_4(%arg0: i32) -> (i32, i32) {
    %c0_i32 = arith.constant 0 : i32
    %c0_i32_0 = arith.constant 0 : i32
    %c0_i32_1 = arith.constant 0 : i32
    return %c0_i32, %c0_i32_0 : i32, i32
  }
  func.func @transform_5(%arg0: i32) -> (i32, i32) {
    %c0_i32 = arith.constant 0 : i32
    %c0_i32_0 = arith.constant 0 : i32
    %c0_i32_1 = arith.constant 0 : i32
    return %c0_i32, %c0_i32_0 : i32, i32
  }
  func.func @transform_6(%arg0: i32) -> (i32, i32) {
    %c0_i32 = arith.constant 0 : i32
    %c0_i32_0 = arith.constant 0 : i32
    return %arg0, %c0_i32 : i32, i32
  }
}

module attributes {stable_mosaic.version = 11 : i64} {
  func.func @gine_aggregate_kernel(%arg0: i32, %arg1: memref<16x128xbf16, #tpu.memory_space<vmem>>, %arg2: memref<128x128xbf16, #tpu.memory_space<vmem>>, %arg3: memref<128x1xi32, #tpu.memory_space<vmem>>, %arg4: memref<1x128xi32, #tpu.memory_space<vmem>>, %arg5: memref<16x128xf32, #tpu.memory_space<vmem>>) attributes {dimension_semantics = [#tpu.dimension_semantics<arbitrary>], iteration_bounds = array<i64: 1>, scalar_prefetch = 0 : i64, scratch_operands = 0 : i64, tpu.core_type = #tpu.core_type<tc>, window_params = [{pipeline_mode = #tpu.pipeline_mode<synchronous>, transform_indices = @transform_0, window_bounds = array<i64: 16, 128>}, {transform_indices = @transform_1, window_bounds = array<i64: 128, 128>}, {transform_indices = @transform_2, window_bounds = array<i64: 128, 1>}, {transform_indices = @transform_3, window_bounds = array<i64: 1, 128>}, {pipeline_mode = #tpu.pipeline_mode<synchronous>, transform_indices = @transform_4, window_bounds = array<i64: 16, 128>}]} {
    %c0_i32 = arith.constant 0 : i32
    %0 = arith.cmpi eq, %arg0, %c0_i32 : i32
    %1 = arith.extui %0 : i1 to i32
    %c0_i32_0 = arith.constant 0 : i32
    %2 = arith.cmpi ne, %1, %c0_i32_0 : i32
    scf.if %2 {
      %cst_14 = arith.constant 0.000000e+00 : f32
      %29 = vector.broadcast %cst_14 : f32 to vector<16x128xf32>
      %c0_15 = arith.constant 0 : index
      %c0_16 = arith.constant 0 : index
      %30 = vector.load %arg5[%c0_15, %c0_16] : memref<16x128xf32, #tpu.memory_space<vmem>>, vector<16x128xf32>
      tpu.vector_store %arg5[%c0_15, %c0_16], %29 {strides = array<i32>} : memref<16x128xf32, #tpu.memory_space<vmem>>, vector<16x128xf32>,
    } else {
    }
    %3 = tpu.iota {dimensions = array<i32: 1>} : vector<128x16xi32>
    %c0 = arith.constant 0 : index
    %c0_1 = arith.constant 0 : index
    %4 = vector.load %arg3[%c0, %c0_1] : memref<128x1xi32, #tpu.memory_space<vmem>>, vector<128x1xi32>
    %5 = vector.broadcast %4 : vector<128x1xi32> to vector<128x16xi32>
    %6 = arith.cmpi eq, %3, %5 : vector<128x16xi32>
    %7 = arith.extui %6 : vector<128x16xi1> to vector<128x16xi32>
    %8 = arith.sitofp %7 : vector<128x16xi32> to vector<128x16xf32>
    %9 = arith.truncf %8 : vector<128x16xf32> to vector<128x16xbf16>
    %c0_2 = arith.constant 0 : index
    %c0_3 = arith.constant 0 : index
    %10 = vector.load %arg1[%c0_2, %c0_3] : memref<16x128xbf16, #tpu.memory_space<vmem>>, vector<16x128xbf16>
    %cst = arith.constant dense<0.000000e+00> : vector<128x128xf32>
    %11 = tpu.matmul %9, %10, %cst {dimension_numbers = #tpu.dot_dimension_numbers<[1], [0], [0], [1], [0, 0, 1, 1], [], []>} : vector<128x16xbf16>, vector<16x128xbf16>, vector<128x128xf32> -> vector<128x128xf32>
    %c0_4 = arith.constant 0 : index
    %c0_5 = arith.constant 0 : index
    %12 = vector.load %arg2[%c0_4, %c0_5] : memref<128x128xbf16, #tpu.memory_space<vmem>>, vector<128x128xbf16>
    %13 = arith.extf %12 : vector<128x128xbf16> to vector<128x128xf32>
    %14 = arith.addf %11, %13 : vector<128x128xf32>
    %cst_6 = arith.constant 0.000000e+00 : f32
    %15 = vector.broadcast %cst_6 : f32 to vector<128x128xf32>
    %16 = arith.maximumf %14, %15 : vector<128x128xf32>
    %17 = tpu.iota {dimensions = array<i32: 0>} : vector<16x128xi32>
    %c0_7 = arith.constant 0 : index
    %c0_8 = arith.constant 0 : index
    %18 = vector.load %arg4[%c0_7, %c0_8] : memref<1x128xi32, #tpu.memory_space<vmem>>, vector<1x128xi32>
    %19 = vector.broadcast %18 : vector<1x128xi32> to vector<16x128xi32>
    %20 = arith.cmpi eq, %17, %19 : vector<16x128xi32>
    %21 = arith.extui %20 : vector<16x128xi1> to vector<16x128xi32>
    %22 = arith.sitofp %21 : vector<16x128xi32> to vector<16x128xf32>
    %23 = arith.truncf %22 : vector<16x128xf32> to vector<16x128xbf16>
    %c0_9 = arith.constant 0 : index
    %c0_10 = arith.constant 0 : index
    %24 = vector.load %arg5[%c0_9, %c0_10] : memref<16x128xf32, #tpu.memory_space<vmem>>, vector<16x128xf32>
    %25 = arith.truncf %16 : vector<128x128xf32> to vector<128x128xbf16>
    %cst_11 = arith.constant dense<0.000000e+00> : vector<16x128xf32>
    %26 = tpu.matmul %23, %25, %cst_11 {dimension_numbers = #tpu.dot_dimension_numbers<[1], [0], [0], [1], [0, 0, 1, 1], [], []>} : vector<16x128xbf16>, vector<128x128xbf16>, vector<16x128xf32> -> vector<16x128xf32>
    %27 = arith.addf %24, %26 : vector<16x128xf32>
    %c0_12 = arith.constant 0 : index
    %c0_13 = arith.constant 0 : index
    %28 = vector.load %arg5[%c0_12, %c0_13] : memref<16x128xf32, #tpu.memory_space<vmem>>, vector<16x128xf32>
    tpu.vector_store %arg5[%c0_12, %c0_13], %27 {strides = array<i32>} : memref<16x128xf32, #tpu.memory_space<vmem>>, vector<16x128xf32>,
    return
  }
  func.func @transform_0(%arg0: i32) -> (i32, i32) {
    %c0_i32 = arith.constant 0 : i32
    %c0_i32_0 = arith.constant 0 : i32
    %c0_i32_1 = arith.constant 0 : i32
    return %c0_i32, %c0_i32_0 : i32, i32
  }
  func.func @transform_1(%arg0: i32) -> (i32, i32) {
    %c0_i32 = arith.constant 0 : i32
    %c0_i32_0 = arith.constant 0 : i32
    return %arg0, %c0_i32 : i32, i32
  }
  func.func @transform_2(%arg0: i32) -> (i32, i32) {
    %c0_i32 = arith.constant 0 : i32
    %c0_i32_0 = arith.constant 0 : i32
    return %arg0, %c0_i32 : i32, i32
  }
  func.func @transform_3(%arg0: i32) -> (i32, i32) {
    %c0_i32 = arith.constant 0 : i32
    %c0_i32_0 = arith.constant 0 : i32
    return %c0_i32, %arg0 : i32, i32
  }
  func.func @transform_4(%arg0: i32) -> (i32, i32) {
    %c0_i32 = arith.constant 0 : i32
    %c0_i32_0 = arith.constant 0 : i32
    %c0_i32_1 = arith.constant 0 : i32
    return %c0_i32, %c0_i32_0 : i32, i32
  }
}

</mosaic_0001>

<bundles_post_ra>
// kernel: gine_conv_forward.3
= control target key start
LH: loop header
LB: loop body
LE: loop exit
PB: predicated region body
PF: predicated region fallthrough
CT: control target
= control target key end

     0   :  { %v398_v1 = vmov 0.0   ;;  %vm399_vm0 = vmmov 0   ;;  %s516_s0 = inlined_call_operand.vmem [shape: f32[16,128], index: 0, kind: input, shape index: {}]   ;;  %s517_s1 = inlined_call_operand.vmem [shape: f32[16,128], index: 1, kind: input, shape index: {}]   ;;  %s518_s2 = inlined_call_operand.vmem [shape: bf16[128,128], index: 2, kind: input, shape index: {}]   ;;  %s519_s3 = inlined_call_operand.vmem [shape: f32[1,128], index: 3, kind: input, shape index: {}]   ;;  %s520_s4 = inlined_call_operand.vmem [shape: bf16[128,128], index: 4, kind: input, shape index: {}]   ;;  %s521_s5 = inlined_call_operand.vmem [shape: f32[1,128], index: 5, kind: input, shape index: {}]   ;;  %s522_s6 = inlined_call_operand.hbm [shape: f32[16,128], index: 6, kind: output, shape index: {}]  }
   0x1   :  { %v358_v0 = vld [vmem:[%s518_s2] sm:$0xff]   ;;  %313 = vmatprep.subr.bf16.mxu0 %v398_v1  ;;  %333 = vmatprep.subr.bf16.mxu1 %v398_v1  ;;  %v359_v2 = vld [vmem:[%s518_s2 + $0x8] sm:$0xff]   ;;  %v360_v3 = vld [vmem:[%s518_s2 + $0x10] sm:$0xff]  }
   0x2   :  { %314 = vmatpush3.bf16.msra.mxu0 %v358_v0  ;;  %329 = vmatprep.mubr.msk.bf16.mxu0 %vm399_vm0, %v398_v1  ;;  %v361_v4 = vld [vmem:[%s518_s2 + $0x18] sm:$0xff]   ;;  %v366_v5 = vld [vmem:[%s520_s4] sm:$0xff]   ;;  %v367_v6 = vld [vmem:[%s520_s4 + $0x8] sm:$0xff]  }
   0x3   :  { %315 = vmatprep.subr.bf16.mxu0 %v398_v1  ;;  %349 = vmatprep.mubr.msk.bf16.mxu1 %vm399_vm0, %v398_v1  ;;  %v362_v7 = vld [vmem:[%s518_s2 + $0x20] sm:$0xff]   ;;  %v368_v8 = vld [vmem:[%s520_s4 + $0x10] sm:$0xff]  }
   0x4   :  { %334 = vmatpush3.bf16.msra.mxu1 %v366_v5 }
   0x5   :  { %335 = vmatprep.subr.bf16.mxu1 %v398_v1 }
   0x6   :  { %316 = vmatpush3.bf16.msra.mxu0 %v359_v2 }
   0x7   :  { %317 = vmatprep.subr.bf16.mxu0 %v398_v1 }
   0x8   :  { %336 = vmatpush3.bf16.msra.mxu1 %v367_v6 }
   0x9   :  { %337 = vmatprep.subr.bf16.mxu1 %v398_v1 }
   0xa   :  { %318 = vmatpush3.bf16.msra.mxu0 %v360_v3 }
   0xb   :  { %319 = vmatprep.subr.bf16.mxu0 %v398_v1 }
   0xe   :  { %320 = vmatpush3.bf16.msra.mxu0 %v361_v4 }
   0xf   :  { %321 = vmatprep.subr.bf16.mxu0 %v398_v1 }
  0x10   :  { %11 = vsyncpa [#allocation3], 0  ;;  %v363_v9 = vld [vmem:[%s518_s2 + $0x28] sm:$0xff]   ;;  %338 = vmatpush3.bf16.msra.mxu1 %v368_v8  ;;  %v369_v10 = vld [vmem:[%s520_s4 + $0x18] sm:$0xff]  }
  0x11   :  { %v364_v11 = vld [vmem:[%s518_s2 + $0x30] sm:$0xff]   ;;  %v25_v12 = vld [vmem:[%s516_s0] sm:$0xff]  ;;  %339 = vmatprep.subr.bf16.mxu1 %v398_v1  ;;  %v26_v13 = vld [vmem:[%s516_s0 + $0x8] sm:$0xff] }
  0x12   :  { %322 = vmatpush3.bf16.msra.mxu0 %v362_v7  ;;  %v27_v14 = vld [vmem:[%s517_s1] sm:$0xff]  ;;  %v28_v15 = vld [vmem:[%s517_s1 + $0x8] sm:$0xff]  ;;  %v365_v19 = vld [vmem:[%s518_s2 + $0x38] sm:$0xff]  }
  0x13   :  { %323 = vmatprep.subr.bf16.mxu0 %v398_v1  ;;  %v370_v16 = vld [vmem:[%s520_s4 + $0x20] sm:$0xff]   ;;  %v29_v17 = vadd.f32 %v27_v14, %v25_v12  ;;  %v30_v18 = vadd.f32 %v28_v15, %v26_v13  ;;  %v371_v20 = vld [vmem:[%s520_s4 + $0x28] sm:$0xff]   ;;  %v372_v22 = vld [vmem:[%s520_s4 + $0x30] sm:$0xff]  }
  0x14   :  { %340 = vmatpush3.bf16.msra.mxu1 %v369_v10  ;;  %v373_v23 = vld [vmem:[%s520_s4 + $0x38] sm:$0xff]   ;;  %v277_v24 = vld [vmem:[%s519_s3] ss:$0 sm:$0xff]  ;;  %s400_s4 = smov [#allocation2]  }
  0x15   :  { %341 = vmatprep.subr.bf16.mxu1 %v398_v1  ;;  %v31_v21 = vpack.c.bf16 %v30_v18, %v29_v17  ;;  %v286_v34 = vld [vmem:[%s521_s5] ss:$0 sm:$0xff]  ;;  %s266_s14 = sshll.u32 %s400_s4, 4  ;;  %s267_s14 = int_to_ptr.vmem [resolvable:$true] %s266_s14 }
  0x16   :  { %324 = vmatpush3.bf16.msra.mxu0 %v363_v9  ;;  %s374_s3 = scalar_lea.vmem %s267_s14, 256  ;;  %p379_p1 = scmp.lt.s32.totalorder %s267_s14, %s267_s14 }
  0x17   :  { %325 = vmatprep.subr.bf16.mxu0 %v398_v1  ;;  %p375_p0 = scmp.ne.s32.totalorder %s267_s14, %s374_s3  ;;  %p380_p2 = scmp.lt.s32.totalorder %s374_s3, %s374_s3 }
  0x18   :  { %342 = vmatpush3.bf16.msra.mxu1 %v370_v16 }
  0x19   :  { %343 = vmatprep.subr.bf16.mxu1 %v398_v1  ;;  %p381_p3 = por %p380_p2, %p379_p1 }
  0x1a   :  { %326 = vmatpush3.bf16.msra.mxu0 %v364_v11 }
  0x1b   :  { %327 = vmatprep.subr.bf16.mxu0 %v398_v1  ;;  %p382_p4 = pnand %p381_p3, %p375_p0 }
  0x1c   :  { %344 = vmatpush3.bf16.msra.mxu1 %v371_v20 }
  0x1d   :  { %345 = vmatprep.subr.bf16.mxu1 %v398_v1 }
  0x1e   :  { %328 = vmatpush3.bf16.msra.mxu0 %v365_v19 }
  0x20   :  { %346 = vmatpush3.bf16.msra.mxu1 %v372_v22 }
  0x21   :  { %330 = vmatmul.mubr.bf16.vlgmr.msra.gmra.mrb[0].mxu0 %v31_v21  ;;  %347 = vmatprep.subr.bf16.mxu1 %v398_v1 }
  0x24   :  { %348 = vmatpush3.bf16.msra.mxu1 %v373_v23 }
  0xf4   :  { %v137_v25 = vpop.f32.mrb[0].mxu0 }
  0xf5   :  { %v138_v26 = vadd.f32 %v277_v24, %v137_v25  ;;  %v331_v27 = vpop.f32.mrb[1].mxu0 }
  0xf6   :  { %v140_v28 = vpop.f32.mrb[2].mxu0 }
  0xf7   :  { %v141_v29 = vadd.f32 %v277_v24, %v140_v28  ;;  %v332_v30 = vpop.f32.mrb[3].mxu0  ;;  %v144_v31 = vmax.f32 %v138_v26, 0.0 }
  0xf9   :  { %v145_v32 = vmax.f32 %v141_v29, 0.0 }
  0xfb   :  { %v146_v33 = vpack.c.bf16 %v145_v32, %v144_v31 }
  0xfd   :  { %350 = vmatmul.mubr.bf16.vlgmr.msra.gmra.mrb[0].mxu1 %v146_v33 }
 0x1d0   :  { %v252_v35 = vpop.f32.mrb[0].mxu1 }
 0x1d1   :  { %v253_v36 = vadd.f32 %v286_v34, %v252_v35  ;;  %v351_v37 = vpop.f32.mrb[1].mxu1 }
 0x1d2   :  { %v255_v38 = vpop.f32.mrb[2].mxu1 }
 0x1d3   :  { %259 = vst [vmem:[#allocation2] sm:$0xff] %v253_v36  ;;  %v256_v39 = vadd.f32 %v286_v34, %v255_v38  ;;  %v352_v40 = vpop.f32.mrb[3].mxu1 }
 0x1d5   :  { %260 = vst [vmem:[#allocation2 + $0x8] sm:$0xff] %v256_v39 }
 0x1d6   :  { %385 = shalt.err (!%p382_p4)
}
 0x1d7   :  { %s386_s16 = scalar_lea.hbm %s522_s6, 256 }
 0x1d8   :  { %p387_p5 = scmp.ne.s32.totalorder %s522_s6, %s386_s16  ;;  %p390_p6 = scmp.lt.u32.totalorder %s386_s16, %s522_s6 }
 0x1da   :  { %p392_p7 = pnand %p390_p6, %p387_p5 }
 0x1dc   :  { %395 = shalt.err (!%p392_p7)
}
 0x1dd   :  { %s401_s21 = smov 128   ;;  %s402_s22 = smov 8  }
 0x1de   :  { %272 = dma.vmem_to_hbm [thread:$0]  %s267_s14, 256, %s522_s6, [#allocation3], %s401_s21, %s401_s21, %s402_s22  }
 0x1df   :  { %396 = dma.done.wait [#allocation3], 256  }
 0x1e0   :  { %397 = vsyncadd [#allocation3], 4294967040 }
 0x1e1   :  { %276 = vsyncpa [#allocation3], 1 }

// kernel: gine_conv_forward.2
= control target key start
LH: loop header
LB: loop body
LE: loop exit
PB: predicated region body
PF: predicated region fallthrough
CT: control target
= control target key end

     0   :  { %v530_v0 = vmov 0   ;;  %v531_v5 = vmov 0.0   ;;  %v24_v19 = vlaneseq  ;;  %vm186_vm4 = vcmask 130048   ;;  %s696_s2 = inlined_call_operand.vmem [shape: s32[128,1], index: 2, kind: input, shape index: {}]   ;;  %s697_s0 = inlined_call_operand.vmem [shape: bf16[16,128], index: 0, kind: input, shape index: {}]   ;;  %s698_s1 = inlined_call_operand.vmem [shape: bf16[128,128], index: 1, kind: input, shape index: {}]   ;;  %s699_s3 = inlined_call_operand.vmem [shape: s32[1,128], index: 3, kind: input, shape index: {}]   ;;  %s700_s4 = inlined_call_operand.vmem [shape: f32[16,128], index: 4, kind: output, shape index: {}]  }
   0x1   :  { %528 = vset.pattern.permute.xlu1 %v530_v0  ;;  %527 = vset.pattern.permute.xlu0 %v530_v0  ;;  %v28_v1 = vld [vmem:[%s696_s2 + $0x10] sm:$0xff]  ;;  %v26_v2 = vld [vmem:[%s696_s2] sm:$0xff]  ;;  %v29_v3 = vld [vmem:[%s696_s2 + $0x18] sm:$0xff] }
   0x2   :  { %49 = vperm.xlu1 %528, %v28_v1   ;;  %43 = vperm.xlu0 %527, %v26_v2   ;;  %v27_v4 = vld [vmem:[%s696_s2 + $0x8] sm:$0xff]  ;;  %v30_v7 = vld [vmem:[%s696_s2 + $0x20] sm:$0xff]  ;;  %v33_v9 = vld [vmem:[%s696_s2 + $0x38] sm:$0xff]  ;;  %v612_v20 = vand.u32 127, %v24_v19 }
   0x3   :  { %503 = vmatprep.subr.bf16.mxu1 %v531_v5  ;;  %v31_v6 = vld [vmem:[%s696_s2 + $0x28] sm:$0xff]  ;;  %v529_v8 = vld [vmem:[%s697_s0] sm:$0xff]   ;;  %v32_v10 = vld [vmem:[%s696_s2 + $0x30] sm:$0xff] }
   0x4   :  { %485 = vmatprep.subr.bf16.mxu0 %v529_v8  ;;  %v35_v11 = vld [vmem:[%s696_s2 + $0x48] sm:$0xff]  ;;  %v34_v12 = vld [vmem:[%s696_s2 + $0x40] sm:$0xff]  ;;  %v37_v13 = vld [vmem:[%s696_s2 + $0x58] sm:$0xff] }
   0x5   :  { %486 = vmatpush3.bf16.msra.mxu0 %v529_v8  ;;  %v36_v14 = vld [vmem:[%s696_s2 + $0x50] sm:$0xff]  ;;  %v39_v15 = vld [vmem:[%s696_s2 + $0x68] sm:$0xff]  ;;  %v38_v16 = vld [vmem:[%s696_s2 + $0x60] sm:$0xff] }
   0x6   :  { %52 = vperm.xlu1 %528, %v29_v3   ;;  %46 = vperm.xlu0 %527, %v27_v4   ;;  %v41_v17 = vld [vmem:[%s696_s2 + $0x78] sm:$0xff]  ;;  %v40_v18 = vld [vmem:[%s696_s2 + $0x70] sm:$0xff]  ;;  %v460_v61 = vld [vmem:[%s698_s1 + $0x8] sm:$0xff]  }
   0x7   :  { %v429_v62 = vld [vmem:[%s698_s1] sm:$0xff]   ;;  %v434_v63 = vunpack.c.l.bf16 %v460_v61  ;;  %v435_v1 = vunpack.c.h.bf16 %v460_v61 }
   0x8   :  { %v430_v0 = vunpack.c.l.bf16 %v429_v62  ;;  %v431_v3 = vunpack.c.h.bf16 %v429_v62 }
   0xa   :  { %58 = vperm.xlu1 %528, %v31_v6   ;;  %55 = vperm.xlu0 %527, %v30_v7  }
   0xe   :  { %64 = vperm.xlu1 %528, %v33_v9   ;;  %61 = vperm.xlu0 %527, %v32_v10   ;;  %v462_v9 = vld [vmem:[%s698_s1 + $0x18] sm:$0xff]  }
  0x12   :  { %70 = vperm.xlu1 %528, %v35_v11   ;;  %67 = vperm.xlu0 %527, %v34_v12   ;;  %v461_v12 = vld [vmem:[%s698_s1 + $0x10] sm:$0xff]  }
  0x16   :  { %76 = vperm.xlu1 %528, %v37_v13   ;;  %73 = vperm.xlu0 %527, %v36_v14  }
  0x1a   :  { %82 = vperm.xlu1 %528, %v39_v15   ;;  %79 = vperm.xlu0 %527, %v38_v16   ;;  %v442_v16 = vunpack.c.l.bf16 %v462_v9 }
  0x1e   :  { %88 = vperm.xlu1 %528, %v41_v17   ;;  %85 = vperm.xlu0 %527, %v40_v18  }
  0x81   :  { %v50_v21 = vpop.permute.xlu1 %49  ;;  %v44_v22 = vpop.permute.xlu0 %43 }
  0x82   :  { %vm92_vm0 = vcmp.eq.s32.totalorder %v612_v20, %v50_v21  ;;  %vm90_vm1 = vcmp.eq.s32.totalorder %v612_v20, %v44_v22  ;;  %v443_v22 = vunpack.c.h.bf16 %v462_v9  ;;  %v325_v9 = vshrl.u32 %v24_v19, 7 }
  0x83   :  { %v400_v25 = vsel %vm92_vm0, 1.0, %v531_v5  ;;  %v398_v26 = vsel %vm90_vm1, 1.0, %v531_v5  ;;  %vm532_vm1 = vmmov 0   ;;  %v533_v19 = vmov 1.0|1.0  }
  0x84   :  { %519 = vmatprep.mubr.msk.bf16.mxu1 %vm532_vm1, %v531_v5 }
  0x85   :  { %v53_v23 = vpop.permute.xlu1 %52  ;;  %v47_v24 = vpop.permute.xlu0 %46 }
  0x86   :  { %vm93_vm2 = vcmp.eq.s32.totalorder %v612_v20, %v53_v23  ;;  %vm91_vm3 = vcmp.eq.s32.totalorder %v612_v20, %v47_v24 }
  0x87   :  { %v401_v27 = vsel %vm93_vm2, 1.0, %v531_v5  ;;  %v399_v28 = vsel %vm91_vm3, 1.0, %v531_v5 }
  0x88   :  { %v139_v29 = vpack.c.bf16 %v401_v27, %v400_v25  ;;  %v138_v30 = vpack.c.bf16 %v399_v28, %v398_v26  ;;  %v439_v25 = vunpack.c.h.bf16 %v461_v12 }
  0x89   :  { %v59_v31 = vpop.permute.xlu1 %58  ;;  %v56_v32 = vpop.permute.xlu0 %55 }
  0x8a   :  { %vm95_vm5 = vcmp.eq.s32.totalorder %v612_v20, %v59_v31  ;;  %vm94_vm6 = vcmp.eq.s32.totalorder %v612_v20, %v56_v32  ;;  %487 = vmatprep.mubr.msk.bf16.mxu0 %vm186_vm4, %v138_v30  ;;  %v464_v30 = vld [vmem:[%s698_s1 + $0x28] sm:$0xff]  }
  0x8b   :  { %v403_v33 = vsel %vm95_vm5, 1.0, %v531_v5  ;;  %v402_v34 = vsel %vm94_vm6, 1.0, %v531_v5  ;;  %488 = vmatmul.mubr.msk.bf16.vlgmr.msra.gmra.mrb[0].mxu0 %vm186_vm4, %v139_v29 }
  0x8c   :  { %v140_v35 = vpack.c.bf16 %v403_v33, %v402_v34  ;;  %v463_v33 = vld [vmem:[%s698_s1 + $0x20] sm:$0xff]  }
  0x8d   :  { %v65_v36 = vpop.permute.xlu1 %64  ;;  %v62_v37 = vpop.permute.xlu0 %61 }
  0x8e   :  { %vm97_vm7 = vcmp.eq.s32.totalorder %v612_v20, %v65_v36  ;;  %vm96_vm8 = vcmp.eq.s32.totalorder %v612_v20, %v62_v37  ;;  %491 = vmatprep.mubr.msk.bf16.mxu0 %vm186_vm4, %v140_v35  ;;  %v450_v37 = vunpack.c.l.bf16 %v464_v30 }
  0x8f   :  { %v405_v38 = vsel %vm97_vm7, 1.0, %v531_v5  ;;  %v404_v39 = vsel %vm96_vm8, 1.0, %v531_v5 }
  0x90   :  { %v141_v40 = vpack.c.bf16 %v405_v38, %v404_v39 }
  0x91   :  { %v71_v41 = vpop.permute.xlu1 %70  ;;  %v68_v42 = vpop.permute.xlu0 %67 }
  0x92   :  { %vm99_vm9 = vcmp.eq.s32.totalorder %v612_v20, %v71_v41  ;;  %vm98_vm10 = vcmp.eq.s32.totalorder %v612_v20, %v68_v42  ;;  %v451_v42 = vunpack.c.h.bf16 %v464_v30 }
  0x93   :  { %v407_v43 = vsel %vm99_vm9, 1.0, %v531_v5  ;;  %v406_v44 = vsel %vm98_vm10, 1.0, %v531_v5  ;;  %492 = vmatmul.mubr.msk.bf16.gmra.mrb[4].mxu0 %vm186_vm4, %v141_v40  ;;  %v446_v40 = vunpack.c.l.bf16 %v463_v33 }
  0x94   :  { %v142_v45 = vpack.c.bf16 %v407_v43, %v406_v44 }
  0x95   :  { %v77_v46 = vpop.permute.xlu1 %76  ;;  %v74_v47 = vpop.permute.xlu0 %73 }
  0x96   :  { %vm101_vm11 = vcmp.eq.s32.totalorder %v612_v20, %v77_v46  ;;  %vm100_vm12 = vcmp.eq.s32.totalorder %v612_v20, %v74_v47  ;;  %495 = vmatprep.mubr.msk.bf16.mxu0 %vm186_vm4, %v142_v45  ;;  %v447_v45 = vunpack.c.h.bf16 %v463_v33 }
  0x97   :  { %v409_v48 = vsel %vm101_vm11, 1.0, %v531_v5  ;;  %v408_v49 = vsel %vm100_vm12, 1.0, %v531_v5 }
  0x98   :  { %v143_v50 = vpack.c.bf16 %v409_v48, %v408_v49 }
  0x99   :  { %v83_v51 = vpop.permute.xlu1 %82  ;;  %v80_v52 = vpop.permute.xlu0 %79 }
  0x9a   :  { %vm103_vm13 = vcmp.eq.s32.totalorder %v612_v20, %v83_v51  ;;  %vm102_vm14 = vcmp.eq.s32.totalorder %v612_v20, %v80_v52 }
  0x9b   :  { %v411_v53 = vsel %vm103_vm13, 1.0, %v531_v5  ;;  %v410_v54 = vsel %vm102_vm14, 1.0, %v531_v5  ;;  %496 = vmatmul.mubr.msk.bf16.gmra.mrb[8].mxu0 %vm186_vm4, %v143_v50  ;;  %v466_v50 = vld [vmem:[%s698_s1 + $0x38] sm:$0xff]  }
  0x9c   :  { %v144_v55 = vpack.c.bf16 %v411_v53, %v410_v54  ;;  %v465_v53 = vld [vmem:[%s698_s1 + $0x30] sm:$0xff]   ;;  %v459_v62 = vunpack.c.h.bf16 %v466_v50 }
  0x9d   :  { %v89_v56 = vpop.permute.xlu1 %88  ;;  %v86_v57 = vpop.permute.xlu0 %85 }
  0x9e   :  { %vm105_vm15 = vcmp.eq.s32.totalorder %v612_v20, %v89_v56  ;;  %vm104_vm0 = vcmp.eq.s32.totalorder %v612_v20, %v86_v57  ;;  %499 = vmatprep.mubr.msk.bf16.mxu0 %vm186_vm4, %v144_v55  ;;  %v438_v20 = vunpack.c.l.bf16 %v461_v12  ;;  %v458_v57 = vunpack.c.l.bf16 %v466_v50 }
  0x9f   :  { %v413_v58 = vsel %vm105_vm15, 1.0, %v531_v5  ;;  %v412_v59 = vsel %vm104_vm0, 1.0, %v531_v5 }
  0xa0   :  { %v145_v60 = vpack.c.bf16 %v413_v58, %v412_v59 }
  0xa3   :  { %500 = vmatmul.mubr.msk.bf16.gmra.mrb[12].mxu0 %vm186_vm4, %v145_v60  ;;  %v454_v60 = vunpack.c.l.bf16 %v465_v53 }
 0x15e   :  { %v489_v2 = vpop.f32.mrb[0].mxu0 }
 0x15f   :  { %v254_v4 = vadd.f32 %v489_v2, %v434_v63  ;;  %v245_v6 = vpop.f32.mrb[1].mxu0 }
 0x160   :  { %v246_v7 = vadd.f32 %v430_v0, %v245_v6  ;;  %v490_v8 = vpop.f32.mrb[2].mxu0 }
 0x161   :  { %v257_v10 = vadd.f32 %v490_v8, %v435_v1  ;;  %v248_v11 = vpop.f32.mrb[3].mxu0  ;;  %v310_v14 = vmax.f32 %v254_v4, 0.0  ;;  %v455_v1 = vunpack.c.h.bf16 %v465_v53 }
 0x162   :  { %v249_v13 = vadd.f32 %v431_v3, %v248_v11  ;;  %v308_v17 = vmax.f32 %v246_v7, 0.0 }
 0x163   :  { %v311_v15 = vmax.f32 %v257_v10, 0.0 }
 0x164   :  { %v309_v18 = vmax.f32 %v249_v13, 0.0 }
 0x165   :  { %v342_v21 = vpack.c.bf16 %v311_v15, %v310_v14 }
 0x166   :  { %v493_v23 = vpop.f32.mrb[4].mxu0  ;;  %v341_v24 = vpack.c.bf16 %v309_v18, %v308_v17  ;;  %v423_v18 = vld [vmem:[%s699_s3] ss:$0 sm:$0xff] }
 0x167   :  { %v270_v26 = vadd.f32 %v493_v23, %v442_v16  ;;  %v261_v27 = vpop.f32.mrb[5].mxu0  ;;  %v326_v16 = vadd.s32 8, %v325_v9  ;;  %vm332_vm2 = vcmp.eq.s32.totalorder %v325_v9, %v423_v18 }
 0x168   :  { %v262_v28 = vadd.f32 %v438_v20, %v261_v27  ;;  %v494_v29 = vpop.f32.mrb[6].mxu0  ;;  %504 = vmatpush3.bf16.msra.mxu1 %v341_v24 }
 0x169   :  { %v273_v31 = vadd.f32 %v494_v29, %v443_v22  ;;  %v264_v32 = vpop.f32.mrb[7].mxu0  ;;  %505 = vmatprep.subr.bf16.mxu1 %v531_v5  ;;  %v314_v35 = vmax.f32 %v270_v26, 0.0  ;;  %vm333_vm3 = vcmp.eq.s32.totalorder %v326_v16, %v423_v18 }
 0x16a   :  { %v265_v34 = vadd.f32 %v439_v25, %v264_v32  ;;  %v312_v38 = vmax.f32 %v262_v28, 0.0  ;;  %vm426_vm4 = vmpackc.low %vm333_vm3, %vm332_vm2 }
 0x16b   :  { %v315_v36 = vmax.f32 %v273_v31, 0.0 }
 0x16c   :  { %v313_v39 = vmax.f32 %v265_v34, 0.0  ;;  %506 = vmatpush3.bf16.msra.mxu1 %v342_v21 }
 0x16d   :  { %v344_v41 = vpack.c.bf16 %v315_v36, %v314_v35  ;;  %507 = vmatprep.subr.bf16.mxu1 %v531_v5 }
 0x16e   :  { %v343_v43 = vpack.c.bf16 %v313_v39, %v312_v38  ;;  %v497_v44 = vpop.f32.mrb[8].mxu0 }
 0x16f   :  { %v286_v46 = vadd.f32 %v497_v44, %v450_v37  ;;  %v277_v47 = vpop.f32.mrb[9].mxu0 }
 0x170   :  { %v278_v48 = vadd.f32 %v446_v40, %v277_v47  ;;  %v498_v49 = vpop.f32.mrb[10].mxu0  ;;  %508 = vmatpush3.bf16.msra.mxu1 %v343_v43 }
 0x171   :  { %v289_v51 = vadd.f32 %v498_v49, %v451_v42  ;;  %v280_v52 = vpop.f32.mrb[11].mxu0  ;;  %509 = vmatprep.subr.bf16.mxu1 %v531_v5  ;;  %v318_v55 = vmax.f32 %v286_v46, 0.0 }
 0x172   :  { %v281_v54 = vadd.f32 %v447_v45, %v280_v52  ;;  %v316_v58 = vmax.f32 %v278_v48, 0.0 }
 0x173   :  { %v319_v56 = vmax.f32 %v289_v51, 0.0 }
 0x174   :  { %v317_v59 = vmax.f32 %v281_v54, 0.0  ;;  %510 = vmatpush3.bf16.msra.mxu1 %v344_v41 }
 0x175   :  { %v346_v61 = vpack.c.bf16 %v319_v56, %v318_v55  ;;  %511 = vmatprep.subr.bf16.mxu1 %v531_v5 }
 0x176   :  { %v345_v63 = vpack.c.bf16 %v317_v59, %v316_v58  ;;  %v501_v0 = vpop.f32.mrb[12].mxu0 }
 0x177   :  { %v302_v2 = vadd.f32 %v501_v0, %v458_v57  ;;  %v293_v3 = vpop.f32.mrb[13].mxu0 }
 0x178   :  { %v294_v4 = vadd.f32 %v454_v60, %v293_v3  ;;  %v502_v6 = vpop.f32.mrb[14].mxu0  ;;  %512 = vmatpush3.bf16.msra.mxu1 %v345_v63 }
 0x179   :  { %v305_v7 = vadd.f32 %v502_v6, %v459_v62  ;;  %v296_v8 = vpop.f32.mrb[15].mxu0  ;;  %513 = vmatprep.subr.bf16.mxu1 %v531_v5  ;;  %v322_v11 = vmax.f32 %v302_v2, 0.0 }
 0x17a   :  { %v297_v10 = vadd.f32 %v455_v1, %v296_v8  ;;  %v320_v13 = vmax.f32 %v294_v4, 0.0 }
 0x17b   :  { %v323_v12 = vmax.f32 %v305_v7, 0.0 }
 0x17c   :  { %v321_v14 = vmax.f32 %v297_v10, 0.0  ;;  %514 = vmatpush3.bf16.msra.mxu1 %v346_v61 }
 0x17d   :  { %v348_v15 = vpack.c.bf16 %v323_v12, %v322_v11  ;;  %515 = vmatprep.subr.bf16.mxu1 %v531_v5 }
 0x17e   :  { %v347_v17 = vpack.c.bf16 %v321_v14, %v320_v13 }
 0x180   :  { %516 = vmatpush3.bf16.msra.mxu1 %v347_v17 }
 0x181   :  { %517 = vmatprep.subr.bf16.mxu1 %v531_v5 }
 0x184   :  { %518 = vmatpush3.bf16.msra.mxu1 %v348_v15 }
 0x187   :  { %520 = vmatmul.mubr.msk.bf16.vlgmr.msra.gmra.mrb[0].mxu1 %vm426_vm4, %v533_v19 }
 0x25a   :  { %v383_v20 = vpop.f32.mrb[0].mxu1 }
 0x25b   :  { %v521_v21 = vpop.f32.mrb[1].mxu1  ;;  %392 = vst [vmem:[%s700_s4] sm:$0xff] %v383_v20 }
 0x25c   :  { %v386_v22 = vpop.f32.mrb[2].mxu1 }
 0x25d   :  { %v522_v23 = vpop.f32.mrb[3].mxu1  ;;  %393 = vst [vmem:[%s700_s4 + $0x8] sm:$0xff] %v386_v22 }

</bundles_post_ra>
